<compile_context>
chip_gen: v6e
topology: v6e:2x2x1
jax: 0.10.0
libtpu: 0.0.40
codegen_flags: <defaults>
</compile_context>

<pallas_src>
import functools

import jax
import jax.numpy as jnp
from jax.experimental import pallas as pl
from jax.experimental.pallas import tpu as pltpu


_VMEM_BUDGET = 40 << 20     # per-step double-buffered footprint budget (v7x-safe)
_VMEM_LIMIT = 48 << 20      # scoped-VMEM limit requested from Mosaic
_TARGET_X_BYTES = 2 << 20   # aim for ~2 MiB of x moved per grid step


def _adain_kernel(x_ref, wb_ref, o_ref, *, eps, inv_hw):
    """One row == one (b, c) instance; reduction along the lane axis.

    x_ref : (rows_blk, HW)  activations
    wb_ref: (rows_blk, 2)   column 0 = weight, column 1 = bias (float32)
    o_ref : (rows_blk, HW)
    """
    x = x_ref[...].astype(jnp.float32)

    # Fused moment pass: two independent lane reductions (no dependence on a
    # broadcasted mean before the second reduction).
    s1 = jnp.sum(x, axis=-1, keepdims=True)
    s2 = jnp.sum(x * x, axis=-1, keepdims=True)
    mean = s1 * inv_hw
    var = jnp.maximum(s2 * inv_hw - mean * mean, 0.0)   # biased var, clamped >= 0

    w = wb_ref[:, 0:1]
    b = wb_ref[:, 1:2]
    a = w * jax.lax.rsqrt(var + eps)    # per-row scale
    bb = b - mean * a                   # per-row shift

    o_ref[...] = (x * a + bb).astype(o_ref.dtype)


def _pick_rows_block(BC, HW, itemsize):
    """Pick (rows_block, padded_BC).

    rows_block is a multiple of the dtype sublane packing (8 f32 / 16 bf16 /
    32 int8-fp8), sized so (double-buffered input block + double-buffered
    output block) stays under the VMEM budget while moving ~2 MiB of x per
    grid step where possible.
    """
    pack = max(8, 32 // itemsize)
    bytes_per_row = HW * itemsize

    max_rows = max(pack, (_VMEM_BUDGET // (4 * bytes_per_row)) // pack * pack)
    target = max(pack, (_TARGET_X_BYTES // bytes_per_row) // pack * pack)
    bc_pack = -(-BC // pack) * pack
    target = min(target, max_rows, bc_pack)

    # Prefer a divisor of BC (no padding): largest multiple of `pack` that
    # divides BC and is <= target.
    best = 0
    r = target
    while r >= pack:
        if BC % r == 0:
            best = r
            break
        r -= pack

    if best >= max(pack, target // 4):
        rows_block, bc_padded = best, BC
    else:
        # No reasonable aligned divisor: pad BC up to a multiple of the
        # target block (padded rows are independent and discarded).
        rows_block = target
        bc_padded = -(-BC // target) * target

    # Keep >= 2 grid steps when possible so the pipeline overlaps and v7x can
    # shard the parallel axis across its two TensorCores.
    if bc_padded // rows_block == 1 and rows_block % (2 * pack) == 0:
        rows_block //= 2

    return rows_block, bc_padded


def adaptive_instance_norm(x, adaptive_params, eps=1e-5, rows_block=None):
    """x: (B, C, H, W); adaptive_params: (B, 2*C). Returns (B, C, H, W)."""
    B, C, H, W = x.shape
    assert adaptive_params.shape == (B, 2 * C)
    BC, HW = B * C, H * W
    itemsize = jnp.dtype(x.dtype).itemsize

    # Match PyTorch: bias = params[:, :C].view(-1), weight = params[:, C:].view(-1).
    bias = adaptive_params[:, :C].reshape(BC)
    weight = adaptive_params[:, C:].reshape(BC)
    wb = jnp.stack([weight, bias], axis=-1).astype(jnp.float32)   # (BC, 2)

    x2d = x.reshape(BC, HW)

    if rows_block is None:
        rows_block, bc_padded = _pick_rows_block(BC, HW, itemsize)
    else:
        pack = max(8, 32 // itemsize)
        rows_block = max(pack, (rows_block // pack) * pack)
        bc_padded = -(-BC // rows_block) * rows_block

    if bc_padded != BC:
        x2d = jnp.pad(x2d, ((0, bc_padded - BC), (0, 0)))
        wb = jnp.pad(wb, ((0, bc_padded - BC), (0, 0)))

    grid = (bc_padded // rows_block,)

    kernel = functools.partial(
        _adain_kernel, eps=float(eps), inv_hw=float(1.0 / HW)
    )

    cost = pl.CostEstimate(
        flops=8 * bc_padded * HW,
        transcendentals=bc_padded,
        bytes_accessed=2 * bc_padded * HW * itemsize + bc_padded * 2 * 4,
    )

    out2d = pl.pallas_call(
        kernel,
        out_shape=jax.ShapeDtypeStruct((bc_padded, HW), x.dtype),
        grid_spec=pltpu.PrefetchScalarGridSpec(
            num_scalar_prefetch=0,
            grid=grid,
            in_specs=[
                pl.BlockSpec((rows_block, HW), lambda i: (i, 0)),
                pl.BlockSpec((rows_block, 2), lambda i: (i, 0)),
            ],
            out_specs=pl.BlockSpec((rows_block, HW), lambda i: (i, 0)),
        ),
        compiler_params=pltpu.CompilerParams(
            dimension_semantics=("parallel",),
            vmem_limit_bytes=_VMEM_LIMIT,
        ),
        cost_estimate=cost,
    )(x2d, wb)

    if bc_padded != BC:
        out2d = out2d[:BC]
    return out2d.reshape(B, C, H, W)


def _reference(x, adaptive_params, eps=1e-5):
    # Pure-JAX reference of the PyTorch forward.
    B, C, H, W = x.shape
    bias = adaptive_params[:, :C].reshape(B, C, 1, 1)
    weight = adaptive_params[:, C:].reshape(B, C, 1, 1)
    xf = x.astype(jnp.float32)
    mean = jnp.mean(xf, axis=(2, 3), keepdims=True)
    var = jnp.mean((xf - mean) ** 2, axis=(2, 3), keepdims=True)
    out = (xf - mean) * jax.lax.rsqrt(var + eps) * weight + bias
    return out.astype(x.dtype)


if __name__ == "__main__":
    key = jax.random.PRNGKey(0)
    k1, k2 = jax.random.split(key)

    B, C, H, W = 2, 4, 16, 16
    x = jax.random.normal(k1, (B, C, H, W), dtype=jnp.float32)
    # adaptive params: (B, 2*C) — first C cols bias, last C cols weight
    adaptive_params = jax.random.normal(k2, (B, 2 * C), dtype=jnp.float32)

    out = adaptive_instance_norm(x, adaptive_params)
    out = jax.block_until_ready(out)

    ref = _reference(x, adaptive_params)
    assert out.shape == (B, C, H, W)
    assert jnp.allclose(out, ref, atol=1e-4, rtol=1e-4), (
        f"max abs diff {jnp.max(jnp.abs(out - ref))}"
    )

    print("KERNEL_OK")
</pallas_src>

<mosaic_0001>
module attributes {stable_mosaic.version = 11 : i64} {
  func.func @_adain_kernel(%arg0: i32, %arg1: memref<8x256xf32, #tpu.memory_space<vmem>>, %arg2: memref<8x2xf32, #tpu.memory_space<vmem>>, %arg3: memref<8x256xf32, #tpu.memory_space<vmem>>) attributes {dimension_semantics = [#tpu.dimension_semantics<parallel>], iteration_bounds = array<i64: 1>, scalar_prefetch = 0 : i64, scratch_operands = 0 : i64, tpu.core_type = #tpu.core_type<tc>, window_params = [{transform_indices = @transform_0, window_bounds = array<i64: 8, 256>}, {transform_indices = @transform_1, window_bounds = array<i64: 8, 2>}, {transform_indices = @transform_2, window_bounds = array<i64: 8, 256>}]} {
    %c0 = arith.constant 0 : index
    %c0_0 = arith.constant 0 : index
    %0 = vector.load %arg1[%c0, %c0_0] : memref<8x256xf32, #tpu.memory_space<vmem>>, vector<8x256xf32>
    %cst = arith.constant dense<0.000000e+00> : vector<8xf32>
    %1 = vector.multi_reduction <add>, %0, %cst [1] : vector<8x256xf32> to vector<8xf32>
    %2 = vector.shape_cast %1 : vector<8xf32> to vector<8x1xf32>
    %3 = arith.mulf %0, %0 : vector<8x256xf32>
    %cst_1 = arith.constant dense<0.000000e+00> : vector<8xf32>
    %4 = vector.multi_reduction <add>, %3, %cst_1 [1] : vector<8x256xf32> to vector<8xf32>
    %5 = vector.shape_cast %4 : vector<8xf32> to vector<8x1xf32>
    %cst_2 = arith.constant 3.906250e-03 : f32
    %6 = vector.broadcast %cst_2 : f32 to vector<8x1xf32>
    %7 = arith.mulf %2, %6 : vector<8x1xf32>
    %cst_3 = arith.constant 3.906250e-03 : f32
    %8 = vector.broadcast %cst_3 : f32 to vector<8x1xf32>
    %9 = arith.mulf %5, %8 : vector<8x1xf32>
    %10 = arith.mulf %7, %7 : vector<8x1xf32>
    %11 = arith.subf %9, %10 : vector<8x1xf32>
    %cst_4 = arith.constant 0.000000e+00 : f32
    %12 = vector.broadcast %cst_4 : f32 to vector<8x1xf32>
    %13 = arith.maximumf %11, %12 : vector<8x1xf32>
    %c0_5 = arith.constant 0 : index
    %c0_6 = arith.constant 0 : index
    %14 = vector.load %arg2[%c0_5, %c0_6] : memref<8x2xf32, #tpu.memory_space<vmem>>, vector<8x1xf32>
    %c0_7 = arith.constant 0 : index
    %c1 = arith.constant 1 : index
    %15 = vector.load %arg2[%c0_7, %c1] : memref<8x2xf32, #tpu.memory_space<vmem>>, vector<8x1xf32>
    %cst_8 = arith.constant 9.99999974E-6 : f32
    %16 = vector.broadcast %cst_8 : f32 to vector<8x1xf32>
    %17 = arith.addf %13, %16 : vector<8x1xf32>
    %18 = math.rsqrt %17 : vector<8x1xf32>
    %19 = arith.mulf %14, %18 : vector<8x1xf32>
    %20 = arith.mulf %7, %19 : vector<8x1xf32>
    %21 = arith.subf %15, %20 : vector<8x1xf32>
    %22 = vector.broadcast %19 : vector<8x1xf32> to vector<8x256xf32>
    %23 = arith.mulf %0, %22 : vector<8x256xf32>
    %24 = vector.broadcast %21 : vector<8x1xf32> to vector<8x256xf32>
    %25 = arith.addf %23, %24 : vector<8x256xf32>
    %c0_9 = arith.constant 0 : index
    %c0_10 = arith.constant 0 : index
    %26 = vector.load %arg3[%c0_9, %c0_10] : memref<8x256xf32, #tpu.memory_space<vmem>>, vector<8x256xf32>
    tpu.vector_store %arg3[%c0_9, %c0_10], %25 {strides = array<i32>} : memref<8x256xf32, #tpu.memory_space<vmem>>, vector<8x256xf32>,
    return
  }
  func.func @transform_0(%arg0: i32) -> (i32, i32) {
    %c0_i32 = arith.constant 0 : i32
    %c0_i32_0 = arith.constant 0 : i32
    return %arg0, %c0_i32 : i32, i32
  }
  func.func @transform_1(%arg0: i32) -> (i32, i32) {
    %c0_i32 = arith.constant 0 : i32
    %c0_i32_0 = arith.constant 0 : i32
    return %arg0, %c0_i32 : i32, i32
  }
  func.func @transform_2(%arg0: i32) -> (i32, i32) {
    %c0_i32 = arith.constant 0 : i32
    %c0_i32_0 = arith.constant 0 : i32
    return %arg0, %c0_i32 : i32, i32
  }
}

</mosaic_0001>

<bundles_post_ra>
// kernel: tpu_custom_call.1
= control target key start
LH: loop header
LB: loop body
LE: loop exit
PB: predicated region body
PF: predicated region fallthrough
CT: control target
= control target key end

     0   :  { %7 = vsyncpa [#allocation3], 0  ;;  %s162_s0 = inlined_call_operand.hbm [shape: f32[8,256], index: 0, kind: input, shape index: {}]   ;;  %s163_s1 = inlined_call_operand.vmem [shape: f32[8,2], index: 1, kind: input, shape index: {}]   ;;  %s164_s2 = inlined_call_operand.hbm [shape: f32[8,256], index: 2, kind: output, shape index: {}]  }
   0x1   :  { %8 = vsyncpa [#allocation4], 0  ;;  %s133_s9 = smov [#allocation2]  }
   0x2   :  { %s15_s10 = sshll.u32 %s133_s9, 4  ;;  %s16_s10 = int_to_ptr.vmem [resolvable:$true] %s15_s10 }
   0x3   :  { %s97_s11 = scalar_lea.vmem %s16_s10, 256  ;;  %p102_p1 = scmp.lt.s32.totalorder %s16_s10, %s16_s10 }
   0x4   :  { %p98_p0 = scmp.ne.s32.totalorder %s16_s10, %s97_s11  ;;  %p103_p2 = scmp.lt.s32.totalorder %s97_s11, %s97_s11 }
   0x6   :  { %p104_p3 = por %p103_p2, %p102_p1 }
   0x8   :  { %p105_p4 = pnand %p104_p3, %p98_p0 }
   0xa   :  { %108 = shalt.err (!%p105_p4)
}
   0xb   :  { %18 = dma.hbm_to_vmem [thread:$0]  %s162_s0, 256, %s16_s10, [#allocation3]  }
   0xc   :  { %129 = dma.done.wait [#allocation3], 256  }
   0xd   :  { %130 = vsyncadd [#allocation3], 4294967040  ;;  %v24_v0 = vld [vmem:[#allocation2] sm:$0xff]  ;;  %v25_v1 = vld [vmem:[#allocation2 + $0x8] sm:$0xff]  ;;  %v134_v6 = vmov 0   ;;  %v135_v15 = vmov 1  }
   0xe   :  { %v26_v2 = vadd.f32 %v25_v1, %v24_v0  ;;  %v29_v3 = vmul.f32 %v24_v0, %v24_v0  ;;  %v30_v4 = vmul.f32 %v25_v1, %v25_v1  ;;  %85 = vset.pattern.permute.xlu1 %v134_v6  ;;  %86 = vset.pattern.permute.xlu0 %v135_v15  ;;  %v39_v16 = vld [vmem:[%s163_s1] sm:$0xff]  ;;  %s136_s15 = smov 1   ;;  %s137_s16 = smov [#allocation5]  }
   0xf   :  { %s71_s17 = sshll.u32 %s137_s16, 4  ;;  %s72_s17 = int_to_ptr.vmem [resolvable:$true] %s71_s17 }
  0x10   :  { %27 = vadd.xlane.f32.xlu0 %v26_v2  ;;  %v31_v5 = vadd.f32 %v30_v4, %v29_v3  ;;  %s109_s1 = scalar_lea.vmem %s72_s17, 256  ;;  %p114_p6 = scmp.lt.s32.totalorder %s72_s17, %s72_s17 }
  0x11   :  { %p110_p5 = scmp.ne.s32.totalorder %s72_s17, %s109_s1  ;;  %p115_p7 = scmp.lt.s32.totalorder %s109_s1, %s109_s1 }
  0x13   :  { %p116_p8 = por %p115_p7, %p114_p6 }
  0x14   :  { %32 = vadd.xlane.f32.xlu0 %v31_v5 }
  0x15   :  { %p117_p9 = pnand %p116_p8, %p110_p5 }
  0x99   :  { %v28_v7 = vpop.xlane.xlu0 %27 }
  0x9a   :  { %v34_v8 = vmul.f32 0.00390625, %v28_v7 }
  0x9c   :  { %v36_v10 = vmul.f32 %v34_v8, %v34_v8 }
  0x9d   :  { %v33_v9 = vpop.xlane.xlu0 %32 }
  0x9e   :  { %v35_v11 = vmul.f32 0.00390625, %v33_v9 }
  0xa0   :  { %v37_v12 = vsub.f32 %v35_v11, %v36_v10 }
  0xa2   :  { %v38_v13 = vmax.f32 %v37_v12, 0.0 }
  0xa4   :  { %v40_v14 = vadd.f32 1e-05, %v38_v13 }
  0xa6   :  { %87 = vrsqrt.f32 %v40_v14 }
  0xb3   :  { %v88_v17 = vpop.eup %87 }
  0xb4   :  { %v42_v18 = vmul.f32 %v88_v17, %v39_v16 }
  0xb6   :  { %v43_v19 = vmul.f32 %v42_v18, %v34_v8 }
  0xb8   :  { %45 = vrot.lane.b32.xlu1 %v43_v19, %s136_s15 }
  0xbc   :  { %51 = vperm.xlu1 %85, %v42_v18  }
 0x12a   :  { %v46_v20 = vpop.permute.xlu1 %45 }
 0x12b   :  { %v48_v21 = vsub.f32 %v39_v16, %v46_v20 }
 0x12d   :  { %58 = vperm.xlu0 %86, %v48_v21  }
 0x137   :  { %v52_v22 = vpop.permute.xlu1 %51 }
 0x138   :  { %v54_v23 = vmul.f32 %v52_v22, %v24_v0  ;;  %v55_v24 = vmul.f32 %v52_v22, %v25_v1 }
 0x1a8   :  { %v59_v25 = vpop.permute.xlu0 %58 }
 0x1a9   :  { %v61_v26 = vadd.f32 %v59_v25, %v54_v23  ;;  %v62_v27 = vadd.f32 %v59_v25, %v55_v24 }
 0x1ab   :  { %63 = vst [vmem:[#allocation5] sm:$0xff] %v61_v26  ;;  %64 = vst [vmem:[#allocation5 + $0x8] sm:$0xff] %v62_v27 }
 0x1ac   :  { %120 = shalt.err (!%p117_p9)
}
 0x1ad   :  { %74 = dma.vmem_to_hbm [thread:$0]  %s72_s17, 256, %s164_s2, [#allocation4]  }
 0x1ae   :  { %131 = dma.done.wait [#allocation4], 256  }
 0x1af   :  { %132 = vsyncadd [#allocation4], 4294967040 }
 0x1b0   :  { %78 = vsyncpa [#allocation3], 1 }
 0x1b1   :  { %79 = vsyncpa [#allocation4], 1 }

</bundles_post_ra>
